<compile_context>
chip_gen: v6e
topology: v6e:2x2x1
jax: 0.10.0
libtpu: 0.0.40
codegen_flags: <defaults>
</compile_context>

<pallas_src>
import functools

import jax
import jax.numpy as jnp
from jax.experimental import pallas as pl
from jax.experimental.pallas import tpu as pltpu


_LANE = 128      # last-dim tile (lanes)
_SUBLANE = 8     # second-to-last-dim tile for f32 (sublanes)
_FUSED_WEIGHT_BUDGET = 16 * 1024 * 1024   # bytes of resident weights allowed


def _round_up(v, m):
    return (v + m - 1) // m * m


def _pick_tile(padded_dim, candidates=(512, 256, 128)):
    for c in candidates:
        if padded_dim % c == 0:
            return c
    return padded_dim


# ----------------------------------------------------------------------------
# Fused whole-MLP kernel (weights small enough to stay resident in VMEM).
# ----------------------------------------------------------------------------
def _fused_mlp_kernel(*refs, n_layers):
    """refs = (x_ref, w0, b0, ..., w_{n-1}, b_{n-1}, out_ref).

    Scales are pre-folded into W/b; ReLU after every hidden layer."""
    x_ref, out_ref = refs[0], refs[-1]
    h = x_ref[...]
    for l in range(n_layers):
        w_ref = refs[1 + 2 * l]
        b_ref = refs[2 + 2 * l]
        h = jnp.dot(h, w_ref[...], preferred_element_type=jnp.float32)
        h = h + b_ref[...]
        if l < n_layers - 1:
            h = jnp.maximum(h, 0.0)   # self.act — assumed ReLU
    out_ref[...] = h.astype(out_ref.dtype)


def fused_mlp(x2, folded_params, n_classes):
    """x2: (B, Din) f32.  folded_params: [(W (din,dout), b (1,dout))] with the
    per-layer scale already folded in.  Returns (B, n_classes)."""
    B, Din = x2.shape

    # Pad every feature dim up to a lane multiple; padded rows/cols are zero
    # so results are unchanged (ReLU(0 + 0) = 0 keeps pads inert layer-to-layer).
    padded = []
    for w, b in folded_params:
        d_in, d_out = w.shape
        d_in_p, d_out_p = _round_up(d_in, _LANE), _round_up(d_out, _LANE)
        padded.append((
            jnp.pad(w, ((0, d_in_p - d_in), (0, d_out_p - d_out))),
            jnp.pad(b, ((0, 0), (0, d_out_p - d_out))),
        ))

    Din_p = padded[0][0].shape[0]
    Dout_p = padded[-1][0].shape[1]

    # Sublane-aligned batch tile; batch axis is a 'parallel' grid axis.
    tm = min(128, _round_up(B, _SUBLANE))
    B_p = _round_up(B, tm)
    x_p = jnp.pad(x2, ((0, B_p - B), (0, Din_p - Din)))

    n_layers = len(padded)
    in_specs = [pl.BlockSpec((tm, Din_p), lambda i: (i, 0))]
    flat = []
    for w, b in padded:
        # Constant index_map: weights/bias stay resident in VMEM across tiles.
        in_specs.append(pl.BlockSpec(w.shape, lambda i: (0, 0)))
        in_specs.append(pl.BlockSpec(b.shape, lambda i: (0, 0)))
        flat += [w, b]

    # VMEM estimate (double-buffered blocks) + explicit limit with headroom,
    # capped at 32 MiB so it is safe on v7x (64 MiB physical) as well.
    w_bytes = sum(w.size * 4 + b.size * 4 for w, b in padded)
    inter_bytes = sum(tm * w.shape[1] * 4 for w, _ in padded)
    est = 2 * (tm * Din_p * 4 + tm * Dout_p * 4 + w_bytes) + inter_bytes
    vmem_limit = int(min(32 * 2**20, max(16 * 2**20, 2 * est)))

    flops = int(sum(2 * B_p * w.shape[0] * w.shape[1] for w, _ in padded))
    bytes_accessed = int(x_p.size * 4 + w_bytes + B_p * Dout_p * 4)

    out = pl.pallas_call(
        functools.partial(_fused_mlp_kernel, n_layers=n_layers),
        out_shape=jax.ShapeDtypeStruct((B_p, Dout_p), jnp.float32),
        grid_spec=pltpu.PrefetchScalarGridSpec(
            num_scalar_prefetch=0,
            grid=(B_p // tm,),
            in_specs=in_specs,
            out_specs=pl.BlockSpec((tm, Dout_p), lambda i: (i, 0)),
        ),
        compiler_params=pltpu.CompilerParams(
            dimension_semantics=("parallel",),
            vmem_limit_bytes=vmem_limit,
        ),
        cost_estimate=pl.CostEstimate(
            flops=flops, transcendentals=0, bytes_accessed=bytes_accessed),
    )(x_p, *flat)
    return out[:B, :n_classes]


# ----------------------------------------------------------------------------
# Tiled single-layer matmul (fallback when weights can't stay resident).
# ----------------------------------------------------------------------------
def _tiled_linear_kernel(x_ref, w_ref, b_ref, o_ref, acc_ref, *, apply_act):
    k = pl.program_id(2)

    @pl.when(k == 0)
    def _():
        acc_ref[...] = jnp.zeros_like(acc_ref)

    acc_ref[...] += jnp.dot(x_ref[...], w_ref[...],
                            preferred_element_type=jnp.float32)

    @pl.when(k == pl.num_programs(2) - 1)
    def _():
        y = acc_ref[...] + b_ref[...]
        if apply_act:
            y = jnp.maximum(y, 0.0)   # ReLU
        o_ref[...] = y.astype(o_ref.dtype)


def tiled_linear(x, w, b, *, apply_act):
    """y = act(x @ w + b) with a (tm, tn, tk) tiled grid + f32 accumulator."""
    M, K = x.shape
    _, N = w.shape

    tm = 128 if M >= 128 else _round_up(M, _SUBLANE)
    M_p = _round_up(M, tm)
    K_p = _round_up(K, _LANE)
    N_p = _round_up(N, _LANE)
    # 128-multiples everywhere (v5e MXU); prefer 256/512 where divisible
    # (v6e/v7x); tile VMEM stays well under the 32 MiB scoped default.
    tk = _pick_tile(K_p)
    tn = _pick_tile(N_p)

    x_p = jnp.pad(x, ((0, M_p - M), (0, K_p - K)))
    w_p = jnp.pad(w, ((0, K_p - K), (0, N_p - N)))
    b_p = jnp.pad(b, ((0, 0), (0, N_p - N)))

    est = 2 * 4 * (tm * tk + tk * tn + tm * tn + tn) + 4 * tm * tn
    vmem_limit = int(min(32 * 2**20, max(16 * 2**20, 2 * est)))

    out = pl.pallas_call(
        functools.partial(_tiled_linear_kernel, apply_act=apply_act),
        out_shape=jax.ShapeDtypeStruct((M_p, N_p), jnp.float32),
        grid_spec=pltpu.PrefetchScalarGridSpec(
            num_scalar_prefetch=0,
            grid=(M_p // tm, N_p // tn, K_p // tk),   # reduction axis last
            in_specs=[
                pl.BlockSpec((tm, tk), lambda i, j, k: (i, k)),
                pl.BlockSpec((tk, tn), lambda i, j, k: (k, j)),
                pl.BlockSpec((1, tn), lambda i, j, k: (0, j)),
            ],
            out_specs=pl.BlockSpec((tm, tn), lambda i, j, k: (i, j)),
            scratch_shapes=[pltpu.VMEM((tm, tn), jnp.float32)],
        ),
        compiler_params=pltpu.CompilerParams(
            dimension_semantics=("parallel", "parallel", "arbitrary"),
            vmem_limit_bytes=vmem_limit,
        ),
        cost_estimate=pl.CostEstimate(
            flops=int(2 * M_p * K_p * N_p),
            transcendentals=0,
            bytes_accessed=int((x_p.size + w_p.size + b_p.size + M_p * N_p) * 4)),
    )(x_p, w_p, b_p)
    return out[:M, :N]


# ----------------------------------------------------------------------------
# Parameter prep + forward pass mirroring the PyTorch module.
# ----------------------------------------------------------------------------
def init_mlp_params(key, input_dim, hidden_dim, L, n_classes):
    """Deterministic init mirroring nn.Linear shapes (W stored transposed)."""
    params = []
    d_in = input_dim
    dims = [hidden_dim] * L + [n_classes]
    for d_out in dims:
        key, kw, kb = jax.random.split(key, 3)
        bound = 1.0 / (d_in ** 0.5)
        w = jax.random.uniform(kw, (d_in, d_out), jnp.float32, -bound, bound)
        b = jax.random.uniform(kb, (1, d_out), jnp.float32, -bound, bound)
        params.append((w, b))
        d_in = d_out
    return params


def fold_scales(params):
    """Fold the PyTorch 1/sqrt(d_in) (hidden) and 1/d_in (output) divisors
    into the weights and biases -> no epilogue multiply in the kernel.
    (PyTorch evaluates x.size(-1) on the *pre-layer* x, i.e. the input dim.)"""
    folded = []
    n = len(params)
    for i, (w, b) in enumerate(params):
        d_in = w.shape[0]
        scale = (1.0 / d_in) if i == n - 1 else (1.0 / (d_in ** 0.5))
        folded.append((w * scale, b * scale))
    return folded


@jax.jit
def mlp_forward(x, params):
    """Reproduces mlp.forward:
       x -> flatten -> [Linear / sqrt(d_in) -> ReLU] * L -> Linear / d_in."""
    B = x.shape[0]
    x2 = x.reshape(B, -1).astype(jnp.float32)
    folded = fold_scales(params)
    n_classes = params[-1][0].shape[1]

    # Resident-weight footprint if everything is fused into one kernel.
    w_bytes = sum(
        (_round_up(w.shape[0], _LANE) * _round_up(w.shape[1], _LANE)
         + _round_up(w.shape[1], _LANE)) * 4
        for w, _ in folded)
    if w_bytes <= _FUSED_WEIGHT_BUDGET:
        # One pallas_call for the whole MLP: no HBM round trips between layers.
        # TODO(synk): for very large resident layers on v6e/v7x, cast weights
        # to bf16 (keep f32 accumulation) to halve weight DMA; kept f32 here
        # for exact parity with the f32 reference.
        return fused_mlp(x2, folded, n_classes)

    # Fallback: per-layer tiled matmuls when weights can't stay in VMEM.
    h = x2
    for li, (w, b) in enumerate(folded):
        h = tiled_linear(h, w, b, apply_act=(li < len(folded) - 1))
    return h


def mlp_reference(x, params):
    """Pure-JAX reference for sanity check."""
    B = x.shape[0]
    x = x.reshape(B, -1).astype(jnp.float32)
    for (w, b) in params[:-1]:
        d_in = x.shape[-1]
        x = jnp.maximum((x @ w + b) / (d_in ** 0.5), 0.0)
    w, b = params[-1]
    x = (x @ w + b) / x.shape[-1]
    return x


if __name__ == "__main__":
    key = jax.random.PRNGKey(0)
    k_x, k_p, k_a, k_w, k_b = jax.random.split(key, 5)

    # Small shapes consistent with the module: NCHW input, flattened inside.
    B, C, H, W = 2, 4, 16, 16
    input_dim = C * H * W          # 1024
    hidden_dim = 32
    L = 2
    n_classes = 8

    x = jax.random.normal(k_x, (B, C, H, W), jnp.float32)
    params = init_mlp_params(k_p, input_dim, hidden_dim, L, n_classes)

    out = jax.block_until_ready(mlp_forward(x, params))
    ref = mlp_reference(x, params)
    assert out.shape == (B, n_classes), out.shape
    assert jnp.allclose(out, ref, atol=1e-4, rtol=1e-4), \
        f"fused max abs err = {jnp.max(jnp.abs(out - ref))}"

    # Also exercise the large-layer fallback path (tiled matmul + accumulator).
    M, K, N = 10, 300, 200
    a = jax.random.normal(k_a, (M, K), jnp.float32)
    wt = jax.random.normal(k_w, (K, N), jnp.float32) * 0.05
    bt = jax.random.normal(k_b, (1, N), jnp.float32)
    got = jax.block_until_ready(tiled_linear(a, wt, bt, apply_act=True))
    want = jnp.maximum(a @ wt + bt, 0.0)
    assert jnp.allclose(got, want, atol=1e-4, rtol=1e-4), \
        f"tiled max abs err = {jnp.max(jnp.abs(got - want))}"

    print("KERNEL_OK")
</pallas_src>

<mosaic_0001>
module attributes {stable_mosaic.version = 11 : i64} {
  func.func @_fused_mlp_kernel(%arg0: i32, %arg1: memref<8x1024xf32, #tpu.memory_space<vmem>>, %arg2: memref<1024x128xf32, #tpu.memory_space<vmem>>, %arg3: memref<1x128xf32, #tpu.memory_space<vmem>>, %arg4: memref<128x128xf32, #tpu.memory_space<vmem>>, %arg5: memref<1x128xf32, #tpu.memory_space<vmem>>, %arg6: memref<128x128xf32, #tpu.memory_space<vmem>>, %arg7: memref<1x128xf32, #tpu.memory_space<vmem>>, %arg8: memref<8x128xf32, #tpu.memory_space<vmem>>) attributes {dimension_semantics = [#tpu.dimension_semantics<parallel>], iteration_bounds = array<i64: 1>, scalar_prefetch = 0 : i64, scratch_operands = 0 : i64, tpu.core_type = #tpu.core_type<tc>, window_params = [{transform_indices = @transform_0, window_bounds = array<i64: 8, 1024>}, {pipeline_mode = #tpu.pipeline_mode<synchronous>, transform_indices = @transform_1, window_bounds = array<i64: 1024, 128>}, {pipeline_mode = #tpu.pipeline_mode<synchronous>, transform_indices = @transform_2, window_bounds = array<i64: 1, 128>}, {pipeline_mode = #tpu.pipeline_mode<synchronous>, transform_indices = @transform_3, window_bounds = array<i64: 128, 128>}, {pipeline_mode = #tpu.pipeline_mode<synchronous>, transform_indices = @transform_4, window_bounds = array<i64: 1, 128>}, {pipeline_mode = #tpu.pipeline_mode<synchronous>, transform_indices = @transform_5, window_bounds = array<i64: 128, 128>}, {pipeline_mode = #tpu.pipeline_mode<synchronous>, transform_indices = @transform_6, window_bounds = array<i64: 1, 128>}, {transform_indices = @transform_7, window_bounds = array<i64: 8, 128>}]} {
    %c0 = arith.constant 0 : index
    %c0_0 = arith.constant 0 : index
    %0 = vector.load %arg1[%c0, %c0_0] : memref<8x1024xf32, #tpu.memory_space<vmem>>, vector<8x1024xf32>
    %c0_1 = arith.constant 0 : index
    %c0_2 = arith.constant 0 : index
    %1 = vector.load %arg2[%c0_1, %c0_2] : memref<1024x128xf32, #tpu.memory_space<vmem>>, vector<1024x128xf32>
    %cst = arith.constant dense<0.000000e+00> : vector<8x128xf32>
    %2 = tpu.matmul %0, %1, %cst {dimension_numbers = #tpu.dot_dimension_numbers<[1], [0], [0], [1], [0, 0, 1, 1], [], []>} : vector<8x1024xf32>, vector<1024x128xf32>, vector<8x128xf32> -> vector<8x128xf32>
    %c0_3 = arith.constant 0 : index
    %c0_4 = arith.constant 0 : index
    %3 = vector.load %arg3[%c0_3, %c0_4] : memref<1x128xf32, #tpu.memory_space<vmem>>, vector<1x128xf32>
    %4 = vector.broadcast %3 : vector<1x128xf32> to vector<8x128xf32>
    %5 = arith.addf %2, %4 : vector<8x128xf32>
    %cst_5 = arith.constant 0.000000e+00 : f32
    %6 = vector.broadcast %cst_5 : f32 to vector<8x128xf32>
    %7 = arith.maximumf %5, %6 : vector<8x128xf32>
    %c0_6 = arith.constant 0 : index
    %c0_7 = arith.constant 0 : index
    %8 = vector.load %arg4[%c0_6, %c0_7] : memref<128x128xf32, #tpu.memory_space<vmem>>, vector<128x128xf32>
    %cst_8 = arith.constant dense<0.000000e+00> : vector<8x128xf32>
    %9 = tpu.matmul %7, %8, %cst_8 {dimension_numbers = #tpu.dot_dimension_numbers<[1], [0], [0], [1], [0, 0, 1, 1], [], []>} : vector<8x128xf32>, vector<128x128xf32>, vector<8x128xf32> -> vector<8x128xf32>
    %c0_9 = arith.constant 0 : index
    %c0_10 = arith.constant 0 : index
    %10 = vector.load %arg5[%c0_9, %c0_10] : memref<1x128xf32, #tpu.memory_space<vmem>>, vector<1x128xf32>
    %11 = vector.broadcast %10 : vector<1x128xf32> to vector<8x128xf32>
    %12 = arith.addf %9, %11 : vector<8x128xf32>
    %cst_11 = arith.constant 0.000000e+00 : f32
    %13 = vector.broadcast %cst_11 : f32 to vector<8x128xf32>
    %14 = arith.maximumf %12, %13 : vector<8x128xf32>
    %c0_12 = arith.constant 0 : index
    %c0_13 = arith.constant 0 : index
    %15 = vector.load %arg6[%c0_12, %c0_13] : memref<128x128xf32, #tpu.memory_space<vmem>>, vector<128x128xf32>
    %cst_14 = arith.constant dense<0.000000e+00> : vector<8x128xf32>
    %16 = tpu.matmul %14, %15, %cst_14 {dimension_numbers = #tpu.dot_dimension_numbers<[1], [0], [0], [1], [0, 0, 1, 1], [], []>} : vector<8x128xf32>, vector<128x128xf32>, vector<8x128xf32> -> vector<8x128xf32>
    %c0_15 = arith.constant 0 : index
    %c0_16 = arith.constant 0 : index
    %17 = vector.load %arg7[%c0_15, %c0_16] : memref<1x128xf32, #tpu.memory_space<vmem>>, vector<1x128xf32>
    %18 = vector.broadcast %17 : vector<1x128xf32> to vector<8x128xf32>
    %19 = arith.addf %16, %18 : vector<8x128xf32>
    %c0_17 = arith.constant 0 : index
    %c0_18 = arith.constant 0 : index
    %20 = vector.load %arg8[%c0_17, %c0_18] : memref<8x128xf32, #tpu.memory_space<vmem>>, vector<8x128xf32>
    tpu.vector_store %arg8[%c0_17, %c0_18], %19 {strides = array<i32>} : memref<8x128xf32, #tpu.memory_space<vmem>>, vector<8x128xf32>,
    return
  }
  func.func @transform_0(%arg0: i32) -> (i32, i32) {
    %c0_i32 = arith.constant 0 : i32
    %c0_i32_0 = arith.constant 0 : i32
    return %arg0, %c0_i32 : i32, i32
  }
  func.func @transform_1(%arg0: i32) -> (i32, i32) {
    %c0_i32 = arith.constant 0 : i32
    %c0_i32_0 = arith.constant 0 : i32
    %c0_i32_1 = arith.constant 0 : i32
    return %c0_i32, %c0_i32_0 : i32, i32
  }
  func.func @transform_2(%arg0: i32) -> (i32, i32) {
    %c0_i32 = arith.constant 0 : i32
    %c0_i32_0 = arith.constant 0 : i32
    %c0_i32_1 = arith.constant 0 : i32
    return %c0_i32, %c0_i32_0 : i32, i32
  }
  func.func @transform_3(%arg0: i32) -> (i32, i32) {
    %c0_i32 = arith.constant 0 : i32
    %c0_i32_0 = arith.constant 0 : i32
    %c0_i32_1 = arith.constant 0 : i32
    return %c0_i32, %c0_i32_0 : i32, i32
  }
  func.func @transform_4(%arg0: i32) -> (i32, i32) {
    %c0_i32 = arith.constant 0 : i32
    %c0_i32_0 = arith.constant 0 : i32
    %c0_i32_1 = arith.constant 0 : i32
    return %c0_i32, %c0_i32_0 : i32, i32
  }
  func.func @transform_5(%arg0: i32) -> (i32, i32) {
    %c0_i32 = arith.constant 0 : i32
    %c0_i32_0 = arith.constant 0 : i32
    %c0_i32_1 = arith.constant 0 : i32
    return %c0_i32, %c0_i32_0 : i32, i32
  }
  func.func @transform_6(%arg0: i32) -> (i32, i32) {
    %c0_i32 = arith.constant 0 : i32
    %c0_i32_0 = arith.constant 0 : i32
    %c0_i32_1 = arith.constant 0 : i32
    return %c0_i32, %c0_i32_0 : i32, i32
  }
  func.func @transform_7(%arg0: i32) -> (i32, i32) {
    %c0_i32 = arith.constant 0 : i32
    %c0_i32_0 = arith.constant 0 : i32
    return %arg0, %c0_i32 : i32, i32
  }
}

</mosaic_0001>

<bundles_post_ra>
// kernel: mlp_forward.1
= control target key start
LH: loop header
LB: loop body
LE: loop exit
PB: predicated region body
PF: predicated region fallthrough
CT: control target
= control target key end

     0   :  { %vm892_vm0 = vmmov 0   ;;  %s1483_s1 = inlined_call_operand.vmem [shape: f32[1024,128], index: 1, kind: input, shape index: {}]   ;;  %s1484_s0 = inlined_call_operand.vmem [shape: f32[8,1024], index: 0, kind: input, shape index: {}]   ;;  %s1485_s3 = inlined_call_operand.vmem [shape: f32[128,128], index: 3, kind: input, shape index: {}]   ;;  %s1486_s5 = inlined_call_operand.vmem [shape: f32[128,128], index: 5, kind: input, shape index: {}]   ;;  %s1487_s2 = inlined_call_operand.vmem [shape: f32[1,128], index: 2, kind: input, shape index: {}]   ;;  %s1488_s4 = inlined_call_operand.vmem [shape: f32[1,128], index: 4, kind: input, shape index: {}]   ;;  %s1489_s6 = inlined_call_operand.vmem [shape: f32[1,128], index: 6, kind: input, shape index: {}]   ;;  %s1490_s7 = inlined_call_operand.vmem [shape: f32[8,128], index: 7, kind: output, shape index: {}]  }
   0x1   :  { %v65_v0 = vld [vmem:[%s1483_s1 + $0xf8] sm:$0xff]  ;;  %v64_v4 = vld [vmem:[%s1483_s1 + $0xf0] sm:$0xff]  ;;  %v63_v8 = vld [vmem:[%s1483_s1 + $0xe8] sm:$0xff] }
   0x2   :  { %v97_v1 = vld [vmem:[%s1483_s1 + $0x1f8] sm:$0xff]  ;;  %645 = vmatprep.subr.mxu0 %v65_v0  ;;  %v96_v5 = vld [vmem:[%s1483_s1 + $0x1f0] sm:$0xff]  ;;  %v95_v9 = vld [vmem:[%s1483_s1 + $0x1e8] sm:$0xff] }
   0x3   :  { %v49_v2 = vld [vmem:[%s1483_s1 + $0x78] sm:$0xff]  ;;  %680 = vmatprep.subr.mxu1 %v97_v1  ;;  %v48_v6 = vld [vmem:[%s1483_s1 + $0x70] sm:$0xff]  ;;  %v47_v10 = vld [vmem:[%s1483_s1 + $0x68] sm:$0xff] }
   0x4   :  { %v81_v3 = vld [vmem:[%s1483_s1 + $0x178] sm:$0xff]  ;;  %646 = vmatpush3.msra.mxu0 %v49_v2  ;;  %v80_v7 = vld [vmem:[%s1483_s1 + $0x170] sm:$0xff]  ;;  %v79_v11 = vld [vmem:[%s1483_s1 + $0x168] sm:$0xff] }
   0x5   :  { %681 = vmatpush3.msra.mxu1 %v81_v3  ;;  %647 = vmatprep.subr.mxu0 %v64_v4  ;;  %v62_v12 = vld [vmem:[%s1483_s1 + $0xe0] sm:$0xff]  ;;  %v61_v16 = vld [vmem:[%s1483_s1 + $0xd8] sm:$0xff]  ;;  %v60_v20 = vld [vmem:[%s1483_s1 + $0xd0] sm:$0xff] }
   0x6   :  { %682 = vmatprep.subr.mxu1 %v96_v5  ;;  %648 = vmatpush3.msra.mxu0 %v48_v6  ;;  %v94_v13 = vld [vmem:[%s1483_s1 + $0x1e0] sm:$0xff]  ;;  %v93_v17 = vld [vmem:[%s1483_s1 + $0x1d8] sm:$0xff]  ;;  %v92_v21 = vld [vmem:[%s1483_s1 + $0x1d0] sm:$0xff] }
   0x7   :  { %683 = vmatpush3.msra.mxu1 %v80_v7  ;;  %649 = vmatprep.subr.mxu0 %v63_v8  ;;  %v46_v14 = vld [vmem:[%s1483_s1 + $0x60] sm:$0xff]  ;;  %v45_v18 = vld [vmem:[%s1483_s1 + $0x58] sm:$0xff]  ;;  %v44_v22 = vld [vmem:[%s1483_s1 + $0x50] sm:$0xff] }
   0x8   :  { %684 = vmatprep.subr.mxu1 %v95_v9  ;;  %v78_v15 = vld [vmem:[%s1483_s1 + $0x160] sm:$0xff]  ;;  %650 = vmatpush3.msra.mxu0 %v47_v10  ;;  %v77_v19 = vld [vmem:[%s1483_s1 + $0x158] sm:$0xff]  ;;  %v76_v23 = vld [vmem:[%s1483_s1 + $0x150] sm:$0xff] }
   0x9   :  { %685 = vmatpush3.msra.mxu1 %v79_v11  ;;  %651 = vmatprep.subr.mxu0 %v62_v12  ;;  %v59_v24 = vld [vmem:[%s1483_s1 + $0xc8] sm:$0xff]  ;;  %v58_v28 = vld [vmem:[%s1483_s1 + $0xc0] sm:$0xff]  ;;  %v57_v32 = vld [vmem:[%s1483_s1 + $0xb8] sm:$0xff] }
   0xa   :  { %686 = vmatprep.subr.mxu1 %v94_v13  ;;  %652 = vmatpush3.msra.mxu0 %v46_v14  ;;  %v91_v25 = vld [vmem:[%s1483_s1 + $0x1c8] sm:$0xff]  ;;  %v90_v29 = vld [vmem:[%s1483_s1 + $0x1c0] sm:$0xff]  ;;  %v89_v33 = vld [vmem:[%s1483_s1 + $0x1b8] sm:$0xff] }
   0xb   :  { %687 = vmatpush3.msra.mxu1 %v78_v15  ;;  %653 = vmatprep.subr.mxu0 %v61_v16  ;;  %v43_v26 = vld [vmem:[%s1483_s1 + $0x48] sm:$0xff]  ;;  %v42_v30 = vld [vmem:[%s1483_s1 + $0x40] sm:$0xff]  ;;  %v41_v34 = vld [vmem:[%s1483_s1 + $0x38] sm:$0xff] }
   0xc   :  { %688 = vmatprep.subr.mxu1 %v93_v17  ;;  %654 = vmatpush3.msra.mxu0 %v45_v18  ;;  %v75_v27 = vld [vmem:[%s1483_s1 + $0x148] sm:$0xff]  ;;  %v74_v31 = vld [vmem:[%s1483_s1 + $0x140] sm:$0xff]  ;;  %v73_v35 = vld [vmem:[%s1483_s1 + $0x138] sm:$0xff] }
   0xd   :  { %689 = vmatpush3.msra.mxu1 %v77_v19  ;;  %655 = vmatprep.subr.mxu0 %v60_v20  ;;  %v56_v36 = vld [vmem:[%s1483_s1 + $0xb0] sm:$0xff]  ;;  %v55_v40 = vld [vmem:[%s1483_s1 + $0xa8] sm:$0xff]  ;;  %v54_v44 = vld [vmem:[%s1483_s1 + $0xa0] sm:$0xff] }
   0xe   :  { %690 = vmatprep.subr.mxu1 %v92_v21  ;;  %656 = vmatpush3.msra.mxu0 %v44_v22  ;;  %v88_v37 = vld [vmem:[%s1483_s1 + $0x1b0] sm:$0xff]  ;;  %v87_v41 = vld [vmem:[%s1483_s1 + $0x1a8] sm:$0xff]  ;;  %v86_v45 = vld [vmem:[%s1483_s1 + $0x1a0] sm:$0xff] }
   0xf   :  { %691 = vmatpush3.msra.mxu1 %v76_v23  ;;  %657 = vmatprep.subr.mxu0 %v59_v24  ;;  %v40_v38 = vld [vmem:[%s1483_s1 + $0x30] sm:$0xff]  ;;  %v39_v42 = vld [vmem:[%s1483_s1 + $0x28] sm:$0xff]  ;;  %v38_v46 = vld [vmem:[%s1483_s1 + $0x20] sm:$0xff] }
  0x10   :  { %692 = vmatprep.subr.mxu1 %v91_v25  ;;  %658 = vmatpush3.msra.mxu0 %v43_v26  ;;  %v72_v39 = vld [vmem:[%s1483_s1 + $0x130] sm:$0xff]  ;;  %v71_v43 = vld [vmem:[%s1483_s1 + $0x128] sm:$0xff]  ;;  %v70_v47 = vld [vmem:[%s1483_s1 + $0x120] sm:$0xff] }
  0x11   :  { %693 = vmatpush3.msra.mxu1 %v75_v27  ;;  %659 = vmatprep.subr.mxu0 %v58_v28  ;;  %v53_v48 = vld [vmem:[%s1483_s1 + $0x98] sm:$0xff]  ;;  %v52_v52 = vld [vmem:[%s1483_s1 + $0x90] sm:$0xff]  ;;  %v51_v56 = vld [vmem:[%s1483_s1 + $0x88] sm:$0xff] }
  0x12   :  { %694 = vmatprep.subr.mxu1 %v90_v29  ;;  %660 = vmatpush3.msra.mxu0 %v42_v30  ;;  %v85_v49 = vld [vmem:[%s1483_s1 + $0x198] sm:$0xff]  ;;  %v84_v53 = vld [vmem:[%s1483_s1 + $0x190] sm:$0xff]  ;;  %v83_v57 = vld [vmem:[%s1483_s1 + $0x188] sm:$0xff] }
  0x13   :  { %695 = vmatpush3.msra.mxu1 %v74_v31  ;;  %661 = vmatprep.subr.mxu0 %v57_v32  ;;  %v37_v50 = vld [vmem:[%s1483_s1 + $0x18] sm:$0xff]  ;;  %v36_v54 = vld [vmem:[%s1483_s1 + $0x10] sm:$0xff]  ;;  %v35_v58 = vld [vmem:[%s1483_s1 + $0x8] sm:$0xff] }
  0x14   :  { %696 = vmatprep.subr.mxu1 %v89_v33  ;;  %662 = vmatpush3.msra.mxu0 %v41_v34  ;;  %v69_v51 = vld [vmem:[%s1483_s1 + $0x118] sm:$0xff]  ;;  %v68_v55 = vld [vmem:[%s1483_s1 + $0x110] sm:$0xff]  ;;  %v67_v59 = vld [vmem:[%s1483_s1 + $0x108] sm:$0xff] }
  0x15   :  { %697 = vmatpush3.msra.mxu1 %v73_v35  ;;  %663 = vmatprep.subr.mxu0 %v56_v36  ;;  %v50_v60 = vld [vmem:[%s1483_s1 + $0x80] sm:$0xff]  ;;  %v27_v63 = vld [vmem:[%s1484_s0 + $0x8] sm:$0xff]  ;;  %v29_v2 = vld [vmem:[%s1484_s0 + $0x18] sm:$0xff] }
  0x16   :  { %698 = vmatprep.subr.mxu1 %v88_v37  ;;  %664 = vmatpush3.msra.mxu0 %v40_v38  ;;  %v82_v61 = vld [vmem:[%s1483_s1 + $0x180] sm:$0xff]  ;;  %v129_v3 = vld [vmem:[%s1483_s1 + $0x2f8] sm:$0xff]  ;;  %v28_v5 = vld [vmem:[%s1484_s0 + $0x10] sm:$0xff] }
  0x17   :  { %699 = vmatpush3.msra.mxu1 %v72_v39  ;;  %665 = vmatprep.subr.mxu0 %v55_v40  ;;  %v34_v62 = vld [vmem:[%s1483_s1] sm:$0xff]  ;;  %v161_v4 = vld [vmem:[%s1483_s1 + $0x3f8] sm:$0xff]  ;;  %v128_v8 = vld [vmem:[%s1483_s1 + $0x2f0] sm:$0xff] }
  0x18   :  { %700 = vmatprep.subr.mxu1 %v87_v41  ;;  %666 = vmatpush3.msra.mxu0 %v39_v42  ;;  %v66_v0 = vld [vmem:[%s1483_s1 + $0x100] sm:$0xff]  ;;  %v113_v6 = vld [vmem:[%s1483_s1 + $0x278] sm:$0xff]  ;;  %v160_v9 = vld [vmem:[%s1483_s1 + $0x3f0] sm:$0xff] }
  0x19   :  { %701 = vmatpush3.msra.mxu1 %v71_v43  ;;  %667 = vmatprep.subr.mxu0 %v54_v44  ;;  %v26_v1 = vld [vmem:[%s1484_s0] sm:$0xff]  ;;  %v145_v7 = vld [vmem:[%s1483_s1 + $0x378] sm:$0xff]  ;;  %v112_v10 = vld [vmem:[%s1483_s1 + $0x270] sm:$0xff] }
  0x1a   :  { %702 = vmatprep.subr.mxu1 %v86_v45  ;;  %668 = vmatpush3.msra.mxu0 %v38_v46  ;;  %v144_v11 = vld [vmem:[%s1483_s1 + $0x370] sm:$0xff]  ;;  %v127_v12 = vld [vmem:[%s1483_s1 + $0x2e8] sm:$0xff]  ;;  %v126_v16 = vld [vmem:[%s1483_s1 + $0x2e0] sm:$0xff] }
  0x1b   :  { %703 = vmatpush3.msra.mxu1 %v70_v47  ;;  %669 = vmatprep.subr.mxu0 %v53_v48  ;;  %v159_v13 = vld [vmem:[%s1483_s1 + $0x3e8] sm:$0xff]  ;;  %v158_v17 = vld [vmem:[%s1483_s1 + $0x3e0] sm:$0xff]  ;;  %v125_v20 = vld [vmem:[%s1483_s1 + $0x2d8] sm:$0xff] }
  0x1c   :  { %704 = vmatprep.subr.mxu1 %v85_v49  ;;  %670 = vmatpush3.msra.mxu0 %v37_v50  ;;  %v111_v14 = vld [vmem:[%s1483_s1 + $0x268] sm:$0xff]  ;;  %v110_v18 = vld [vmem:[%s1483_s1 + $0x260] sm:$0xff]  ;;  %v157_v21 = vld [vmem:[%s1483_s1 + $0x3d8] sm:$0xff] }
  0x1d   :  { %705 = vmatpush3.msra.mxu1 %v69_v51  ;;  %671 = vmatprep.subr.mxu0 %v52_v52  ;;  %v143_v15 = vld [vmem:[%s1483_s1 + $0x368] sm:$0xff]  ;;  %v142_v19 = vld [vmem:[%s1483_s1 + $0x360] sm:$0xff]  ;;  %v109_v22 = vld [vmem:[%s1483_s1 + $0x258] sm:$0xff] }
  0x1e   :  { %706 = vmatprep.subr.mxu1 %v84_v53  ;;  %672 = vmatpush3.msra.mxu0 %v36_v54  ;;  %v141_v23 = vld [vmem:[%s1483_s1 + $0x358] sm:$0xff]  ;;  %v124_v24 = vld [vmem:[%s1483_s1 + $0x2d0] sm:$0xff]  ;;  %v123_v28 = vld [vmem:[%s1483_s1 + $0x2c8] sm:$0xff] }
  0x1f   :  { %707 = vmatpush3.msra.mxu1 %v68_v55  ;;  %673 = vmatprep.subr.mxu0 %v51_v56  ;;  %v156_v25 = vld [vmem:[%s1483_s1 + $0x3d0] sm:$0xff]  ;;  %v155_v29 = vld [vmem:[%s1483_s1 + $0x3c8] sm:$0xff]  ;;  %v122_v32 = vld [vmem:[%s1483_s1 + $0x2c0] sm:$0xff] }
  0x20   :  { %708 = vmatprep.subr.mxu1 %v83_v57  ;;  %674 = vmatpush3.msra.mxu0 %v35_v58  ;;  %v108_v26 = vld [vmem:[%s1483_s1 + $0x250] sm:$0xff]  ;;  %v107_v30 = vld [vmem:[%s1483_s1 + $0x248] sm:$0xff]  ;;  %v154_v33 = vld [vmem:[%s1483_s1 + $0x3c0] sm:$0xff] }
  0x21   :  { %709 = vmatpush3.msra.mxu1 %v67_v59  ;;  %675 = vmatprep.subr.mxu0 %v50_v60  ;;  %v140_v27 = vld [vmem:[%s1483_s1 + $0x350] sm:$0xff]  ;;  %v139_v31 = vld [vmem:[%s1483_s1 + $0x348] sm:$0xff]  ;;  %v106_v34 = vld [vmem:[%s1483_s1 + $0x240] sm:$0xff] }
  0x22   :  { %710 = vmatprep.subr.mxu1 %v82_v61  ;;  %676 = vmatpush3.msra.mxu0 %v34_v62  ;;  %v138_v35 = vld [vmem:[%s1483_s1 + $0x340] sm:$0xff]  ;;  %v121_v36 = vld [vmem:[%s1483_s1 + $0x2b8] sm:$0xff]  ;;  %v120_v40 = vld [vmem:[%s1483_s1 + $0x2b0] sm:$0xff] }
  0x23   :  { %233 = vmatprep.mubr.f32.mxu0 %v27_v63  ;;  %711 = vmatpush3.msra.mxu1 %v66_v0  ;;  %v153_v37 = vld [vmem:[%s1483_s1 + $0x3b8] sm:$0xff]  ;;  %v152_v41 = vld [vmem:[%s1483_s1 + $0x3b0] sm:$0xff]  ;;  %v119_v44 = vld [vmem:[%s1483_s1 + $0x2a8] sm:$0xff] }
  0x24   :  { %234 = vmatmul.mubr.f32.vlgmr.msra.gmra.mxu0 %v26_v1  ;;  %303 = vmatprep.mubr.f32.mxu1 %v29_v2  ;;  %v105_v38 = vld [vmem:[%s1483_s1 + $0x238] sm:$0xff]  ;;  %v104_v42 = vld [vmem:[%s1483_s1 + $0x230] sm:$0xff]  ;;  %v151_v45 = vld [vmem:[%s1483_s1 + $0x3a8] sm:$0xff] }
  0x25   :  { %715 = vmatprep.subr.mxu0 %v129_v3  ;;  %750 = vmatprep.subr.mxu1 %v161_v4  ;;  %v137_v39 = vld [vmem:[%s1483_s1 + $0x338] sm:$0xff]  ;;  %v136_v43 = vld [vmem:[%s1483_s1 + $0x330] sm:$0xff]  ;;  %v103_v46 = vld [vmem:[%s1483_s1 + $0x228] sm:$0xff] }
  0x26   :  { %304 = vmatmul.mubr.f32.vlgmr.msra.gmra.mxu1 %v28_v5  ;;  %716 = vmatpush3.msra.mxu0 %v113_v6  ;;  %v135_v47 = vld [vmem:[%s1483_s1 + $0x328] sm:$0xff]  ;;  %v118_v48 = vld [vmem:[%s1483_s1 + $0x2a0] sm:$0xff]  ;;  %v117_v52 = vld [vmem:[%s1483_s1 + $0x298] sm:$0xff] }
  0x27   :  { %751 = vmatpush3.msra.mxu1 %v145_v7  ;;  %717 = vmatprep.subr.mxu0 %v128_v8  ;;  %v150_v49 = vld [vmem:[%s1483_s1 + $0x3a0] sm:$0xff]  ;;  %v149_v53 = vld [vmem:[%s1483_s1 + $0x398] sm:$0xff]  ;;  %v116_v56 = vld [vmem:[%s1483_s1 + $0x290] sm:$0xff]  ;;  %v891_v8 = vmov 0.0  }
  0x28   :  { %752 = vmatprep.subr.mxu1 %v160_v9  ;;  %718 = vmatpush3.msra.mxu0 %v112_v10  ;;  %v102_v50 = vld [vmem:[%s1483_s1 + $0x220] sm:$0xff]  ;;  %v101_v54 = vld [vmem:[%s1483_s1 + $0x218] sm:$0xff]  ;;  %v148_v57 = vld [vmem:[%s1483_s1 + $0x390] sm:$0xff] }
  0x29   :  { %753 = vmatpush3.msra.mxu1 %v144_v11  ;;  %719 = vmatprep.subr.mxu0 %v127_v12  ;;  %v134_v51 = vld [vmem:[%s1483_s1 + $0x320] sm:$0xff]  ;;  %v133_v55 = vld [vmem:[%s1483_s1 + $0x318] sm:$0xff]  ;;  %v100_v58 = vld [vmem:[%s1483_s1 + $0x210] sm:$0xff] }
  0x2a   :  { %754 = vmatprep.subr.mxu1 %v159_v13  ;;  %720 = vmatpush3.msra.mxu0 %v111_v14  ;;  %v132_v59 = vld [vmem:[%s1483_s1 + $0x310] sm:$0xff]  ;;  %v115_v60 = vld [vmem:[%s1483_s1 + $0x288] sm:$0xff]  ;;  %v114_v0 = vld [vmem:[%s1483_s1 + $0x280] sm:$0xff] }
  0x2b   :  { %755 = vmatpush3.msra.mxu1 %v143_v15  ;;  %721 = vmatprep.subr.mxu0 %v126_v16  ;;  %v147_v61 = vld [vmem:[%s1483_s1 + $0x388] sm:$0xff]  ;;  %v146_v1 = vld [vmem:[%s1483_s1 + $0x380] sm:$0xff]  ;;  %v33_v5 = vld [vmem:[%s1484_s0 + $0x38] sm:$0xff] }
  0x2c   :  { %756 = vmatprep.subr.mxu1 %v158_v17  ;;  %722 = vmatpush3.msra.mxu0 %v110_v18  ;;  %v99_v62 = vld [vmem:[%s1483_s1 + $0x208] sm:$0xff]  ;;  %v98_v2 = vld [vmem:[%s1483_s1 + $0x200] sm:$0xff]  ;;  %v32_v7 = vld [vmem:[%s1484_s0 + $0x30] sm:$0xff] }
  0x2d   :  { %757 = vmatpush3.msra.mxu1 %v142_v19  ;;  %723 = vmatprep.subr.mxu0 %v125_v20  ;;  %v131_v63 = vld [vmem:[%s1483_s1 + $0x308] sm:$0xff]  ;;  %v130_v4 = vld [vmem:[%s1483_s1 + $0x300] sm:$0xff]  ;;  %v465_v9 = vld [vmem:[%s1485_s3 + $0x78] sm:$0xff] }
  0x2e   :  { %758 = vmatprep.subr.mxu1 %v157_v21  ;;  %724 = vmatpush3.msra.mxu0 %v109_v22  ;;  %v31_v3 = vld [vmem:[%s1484_s0 + $0x28] sm:$0xff]  ;;  %v30_v6 = vld [vmem:[%s1484_s0 + $0x20] sm:$0xff]  ;;  %v464_v10 = vld [vmem:[%s1485_s3 + $0x70] sm:$0xff] }
  0x2f   :  { %759 = vmatpush3.msra.mxu1 %v141_v23  ;;  %725 = vmatprep.subr.mxu0 %v124_v24  ;;  %v463_v11 = vld [vmem:[%s1485_s3 + $0x68] sm:$0xff]  ;;  %v462_v12 = vld [vmem:[%s1485_s3 + $0x60] sm:$0xff]  ;;  %v461_v13 = vld [vmem:[%s1485_s3 + $0x58] sm:$0xff] }
  0x30   :  { %760 = vmatprep.subr.mxu1 %v156_v25  ;;  %726 = vmatpush3.msra.mxu0 %v108_v26  ;;  %v460_v14 = vld [vmem:[%s1485_s3 + $0x50] sm:$0xff]  ;;  %v459_v15 = vld [vmem:[%s1485_s3 + $0x48] sm:$0xff]  ;;  %v458_v16 = vld [vmem:[%s1485_s3 + $0x40] sm:$0xff] }
  0x31   :  { %761 = vmatpush3.msra.mxu1 %v140_v27  ;;  %727 = vmatprep.subr.mxu0 %v123_v28  ;;  %v457_v17 = vld [vmem:[%s1485_s3 + $0x38] sm:$0xff]  ;;  %v456_v18 = vld [vmem:[%s1485_s3 + $0x30] sm:$0xff]  ;;  %v455_v19 = vld [vmem:[%s1485_s3 + $0x28] sm:$0xff] }
  0x32   :  { %762 = vmatprep.subr.mxu1 %v155_v29  ;;  %728 = vmatpush3.msra.mxu0 %v107_v30  ;;  %v454_v20 = vld [vmem:[%s1485_s3 + $0x20] sm:$0xff]  ;;  %v453_v21 = vld [vmem:[%s1485_s3 + $0x18] sm:$0xff]  ;;  %v452_v22 = vld [vmem:[%s1485_s3 + $0x10] sm:$0xff] }
  0x33   :  { %763 = vmatpush3.msra.mxu1 %v139_v31  ;;  %729 = vmatprep.subr.mxu0 %v122_v32  ;;  %v451_v23 = vld [vmem:[%s1485_s3 + $0x8] sm:$0xff]  ;;  %v450_v24 = vld [vmem:[%s1485_s3] sm:$0xff]  ;;  %v559_v25 = vld [vmem:[%s1486_s5 + $0x78] sm:$0xff] }
  0x34   :  { %764 = vmatprep.subr.mxu1 %v154_v33  ;;  %730 = vmatpush3.msra.mxu0 %v106_v34  ;;  %v558_v26 = vld [vmem:[%s1486_s5 + $0x70] sm:$0xff]  ;;  %v557_v27 = vld [vmem:[%s1486_s5 + $0x68] sm:$0xff]  ;;  %v556_v28 = vld [vmem:[%s1486_s5 + $0x60] sm:$0xff] }
  0x35   :  { %765 = vmatpush3.msra.mxu1 %v138_v35  ;;  %731 = vmatprep.subr.mxu0 %v121_v36  ;;  %v555_v29 = vld [vmem:[%s1486_s5 + $0x58] sm:$0xff]  ;;  %v554_v30 = vld [vmem:[%s1486_s5 + $0x50] sm:$0xff]  ;;  %v553_v31 = vld [vmem:[%s1486_s5 + $0x48] sm:$0xff] }
  0x36   :  { %766 = vmatprep.subr.mxu1 %v153_v37  ;;  %732 = vmatpush3.msra.mxu0 %v105_v38  ;;  %v552_v32 = vld [vmem:[%s1486_s5 + $0x40] sm:$0xff]  ;;  %v551_v33 = vld [vmem:[%s1486_s5 + $0x38] sm:$0xff]  ;;  %v550_v34 = vld [vmem:[%s1486_s5 + $0x30] sm:$0xff] }
  0x37   :  { %767 = vmatpush3.msra.mxu1 %v137_v39  ;;  %733 = vmatprep.subr.mxu0 %v120_v40  ;;  %v549_v35 = vld [vmem:[%s1486_s5 + $0x28] sm:$0xff]  ;;  %v548_v36 = vld [vmem:[%s1486_s5 + $0x20] sm:$0xff]  ;;  %v547_v37 = vld [vmem:[%s1486_s5 + $0x18] sm:$0xff] }
  0x38   :  { %768 = vmatprep.subr.mxu1 %v152_v41  ;;  %734 = vmatpush3.msra.mxu0 %v104_v42  ;;  %v642_v42 = vld [vmem:[%s1487_s2] ss:$0 sm:$0xff] }
  0x39   :  { %769 = vmatpush3.msra.mxu1 %v136_v43  ;;  %735 = vmatprep.subr.mxu0 %v119_v44 }
  0x3a   :  { %770 = vmatprep.subr.mxu1 %v151_v45  ;;  %736 = vmatpush3.msra.mxu0 %v103_v46 }
  0x3b   :  { %771 = vmatpush3.msra.mxu1 %v135_v47  ;;  %737 = vmatprep.subr.mxu0 %v118_v48 }
  0x3c   :  { %772 = vmatprep.subr.mxu1 %v150_v49  ;;  %738 = vmatpush3.msra.mxu0 %v102_v50 }
  0x3d   :  { %773 = vmatpush3.msra.mxu1 %v134_v51  ;;  %739 = vmatprep.subr.mxu0 %v117_v52 }
  0x3e   :  { %774 = vmatprep.subr.mxu1 %v149_v53  ;;  %740 = vmatpush3.msra.mxu0 %v101_v54 }
  0x3f   :  { %775 = vmatpush3.msra.mxu1 %v133_v55  ;;  %741 = vmatprep.subr.mxu0 %v116_v56  ;;  %v546_v56 = vld [vmem:[%s1486_s5 + $0x10] sm:$0xff] }
  0x40   :  { %776 = vmatprep.subr.mxu1 %v148_v57  ;;  %742 = vmatpush3.msra.mxu0 %v100_v58  ;;  %v545_v57 = vld [vmem:[%s1486_s5 + $0x8] sm:$0xff]  ;;  %v544_v58 = vld [vmem:[%s1486_s5] sm:$0xff] }
  0x41   :  { %777 = vmatpush3.msra.mxu1 %v132_v59  ;;  %743 = vmatprep.subr.mxu0 %v115_v60  ;;  %v643_v59 = vld [vmem:[%s1488_s4] ss:$0 sm:$0xff] }
  0x42   :  { %778 = vmatprep.subr.mxu1 %v147_v61  ;;  %744 = vmatpush3.msra.mxu0 %v99_v62 }
  0x43   :  { %779 = vmatpush3.msra.mxu1 %v131_v63  ;;  %745 = vmatprep.subr.mxu0 %v114_v0  ;;  %v644_v0 = vld [vmem:[%s1489_s6] ss:$0 sm:$0xff] }
  0x44   :  { %780 = vmatprep.subr.mxu1 %v146_v1  ;;  %746 = vmatpush3.msra.mxu0 %v98_v2 }
  0x45   :  { %373 = vmatprep.mubr.f32.mxu0 %v31_v3  ;;  %781 = vmatpush3.msra.mxu1 %v130_v4 }
  0x46   :  { %443 = vmatprep.mubr.f32.mxu1 %v33_v5  ;;  %374 = vmatmul.mubr.f32.vlgmr.msra.gmra.mxu0 %v30_v6 }
  0x47   :  { %444 = vmatmul.mubr.f32.vlgmr.msra.gmra.mxu1 %v32_v7  ;;  %819 = vmatprep.subr.mxu0 %v891_v8 }
  0x48   :  { %854 = vmatprep.subr.mxu1 %v891_v8  ;;  %820 = vmatpush3.msra.mxu0 %v465_v9 }
  0x49   :  { %821 = vmatprep.subr.mxu0 %v891_v8  ;;  %851 = vmatprep.mubr.msk.f32.mxu0 %vm892_vm0, %v891_v8 }
  0x4a   :  { %822 = vmatpush3.msra.mxu0 %v464_v10  ;;  %886 = vmatprep.mubr.msk.f32.mxu1 %vm892_vm0, %v891_v8 }
  0x4b   :  { %823 = vmatprep.subr.mxu0 %v891_v8  ;;  %855 = vmatpush3.msra.mxu1 %v559_v25 }
  0x4c   :  { %824 = vmatpush3.msra.mxu0 %v463_v11  ;;  %856 = vmatprep.subr.mxu1 %v891_v8 }
  0x4d   :  { %825 = vmatprep.subr.mxu0 %v891_v8  ;;  %857 = vmatpush3.msra.mxu1 %v558_v26 }
  0x4e   :  { %826 = vmatpush3.msra.mxu0 %v462_v12  ;;  %858 = vmatprep.subr.mxu1 %v891_v8 }
  0x4f   :  { %827 = vmatprep.subr.mxu0 %v891_v8  ;;  %859 = vmatpush3.msra.mxu1 %v557_v27 }
  0x50   :  { %828 = vmatpush3.msra.mxu0 %v461_v13  ;;  %860 = vmatprep.subr.mxu1 %v891_v8 }
  0x51   :  { %829 = vmatprep.subr.mxu0 %v891_v8  ;;  %861 = vmatpush3.msra.mxu1 %v556_v28 }
  0x52   :  { %830 = vmatpush3.msra.mxu0 %v460_v14  ;;  %862 = vmatprep.subr.mxu1 %v891_v8 }
  0x53   :  { %831 = vmatprep.subr.mxu0 %v891_v8  ;;  %863 = vmatpush3.msra.mxu1 %v555_v29 }
  0x54   :  { %832 = vmatpush3.msra.mxu0 %v459_v15  ;;  %864 = vmatprep.subr.mxu1 %v891_v8 }
  0x55   :  { %833 = vmatprep.subr.mxu0 %v891_v8  ;;  %865 = vmatpush3.msra.mxu1 %v554_v30 }
  0x56   :  { %834 = vmatpush3.msra.mxu0 %v458_v16  ;;  %866 = vmatprep.subr.mxu1 %v891_v8 }
  0x57   :  { %835 = vmatprep.subr.mxu0 %v891_v8  ;;  %867 = vmatpush3.msra.mxu1 %v553_v31 }
  0x58   :  { %836 = vmatpush3.msra.mxu0 %v457_v17  ;;  %868 = vmatprep.subr.mxu1 %v891_v8 }
  0x59   :  { %837 = vmatprep.subr.mxu0 %v891_v8  ;;  %869 = vmatpush3.msra.mxu1 %v552_v32 }
  0x5a   :  { %838 = vmatpush3.msra.mxu0 %v456_v18  ;;  %870 = vmatprep.subr.mxu1 %v891_v8 }
  0x5b   :  { %839 = vmatprep.subr.mxu0 %v891_v8  ;;  %871 = vmatpush3.msra.mxu1 %v551_v33 }
  0x5c   :  { %840 = vmatpush3.msra.mxu0 %v455_v19  ;;  %872 = vmatprep.subr.mxu1 %v891_v8 }
  0x5d   :  { %841 = vmatprep.subr.mxu0 %v891_v8  ;;  %873 = vmatpush3.msra.mxu1 %v550_v34 }
  0x5e   :  { %842 = vmatpush3.msra.mxu0 %v454_v20  ;;  %874 = vmatprep.subr.mxu1 %v891_v8 }
  0x5f   :  { %843 = vmatprep.subr.mxu0 %v891_v8  ;;  %875 = vmatpush3.msra.mxu1 %v549_v35 }
  0x60   :  { %844 = vmatpush3.msra.mxu0 %v453_v21  ;;  %876 = vmatprep.subr.mxu1 %v891_v8 }
  0x61   :  { %845 = vmatprep.subr.mxu0 %v891_v8  ;;  %877 = vmatpush3.msra.mxu1 %v548_v36 }
  0x62   :  { %846 = vmatpush3.msra.mxu0 %v452_v22  ;;  %878 = vmatprep.subr.mxu1 %v891_v8 }
  0x63   :  { %847 = vmatprep.subr.mxu0 %v891_v8  ;;  %879 = vmatpush3.msra.mxu1 %v547_v37 }
  0x64   :  { %848 = vmatpush3.msra.mxu0 %v451_v23  ;;  %880 = vmatprep.subr.mxu1 %v891_v8 }
  0x65   :  { %849 = vmatprep.subr.mxu0 %v891_v8  ;;  %881 = vmatpush3.msra.mxu1 %v546_v56 }
  0x66   :  { %850 = vmatpush3.msra.mxu0 %v450_v24  ;;  %882 = vmatprep.subr.mxu1 %v891_v8 }
  0x67   :  { %883 = vmatpush3.msra.mxu1 %v545_v57 }
  0x68   :  { %884 = vmatprep.subr.mxu1 %v891_v8 }
  0x69   :  { %885 = vmatpush3.msra.mxu1 %v544_v58 }
  0xe4   :  { %v677_v38 = vpop.f32.mrf.mxu0 }
  0xe6   :  { %v712_v39 = vpop.f32.mrf.mxu1  ;;  %v678_v40 = vpop.f32.mrf.mxu0 }
  0xe7   :  { %v679_v41 = vadd.f32 %v678_v40, %v677_v38 }
  0xe8   :  { %v713_v43 = vpop.f32.mrf.mxu1 }
  0xe9   :  { %v236_v44 = vadd.f32 %v679_v41, %v642_v42  ;;  %v714_v45 = vadd.f32 %v713_v43, %v712_v39 }
  0xeb   :  { %v306_v50 = vadd.f32 %v714_v45, %v236_v44 }
 0x106   :  { %v747_v46 = vpop.f32.mrf.mxu0 }
 0x107   :  { %v782_v47 = vpop.f32.mrf.mxu1 }
 0x108   :  { %v748_v48 = vpop.f32.mrf.mxu0 }
 0x109   :  { %v783_v49 = vpop.f32.mrf.mxu1  ;;  %v749_v51 = vadd.f32 %v748_v48, %v747_v46 }
 0x10a   :  { %v784_v53 = vadd.f32 %v783_v49, %v782_v47 }
 0x10b   :  { %v376_v52 = vadd.f32 %v749_v51, %v306_v50 }
 0x10d   :  { %v446_v54 = vadd.f32 %v784_v53, %v376_v52 }
 0x10f   :  { %v449_v55 = vmax.f32 %v446_v54, 0.0 }
 0x111   :  { %852 = vmatmul.mubr.f32.vlgmr.msra.gmra.mxu0 %v449_v55 }
 0x1d1   :  { %v539_v60 = vpop.f32.mrf.mxu0 }
 0x1d2   :  { %v540_v61 = vadd.f32 %v643_v59, %v539_v60 }
 0x1d3   :  { %v853_v62 = vpop.f32.mrf.mxu0 }
 0x1d4   :  { %v543_v63 = vmax.f32 %v540_v61, 0.0 }
 0x1d6   :  { %887 = vmatmul.mubr.f32.vlgmr.msra.gmra.mxu1 %v543_v63 }
 0x296   :  { %v633_v1 = vpop.f32.mrf.mxu1 }
 0x297   :  { %v634_v2 = vadd.f32 %v644_v0, %v633_v1 }
 0x298   :  { %v888_v3 = vpop.f32.mrf.mxu1 }
 0x299   :  { %637 = vst [vmem:[%s1490_s7] sm:$0xff] %v634_v2 }

</bundles_post_ra>
